<compile_context>
chip_gen: v7x
topology: tpu7x:2x2x1
jax: 0.10.0
libtpu: 0.0.40
codegen_flags: <defaults>
</compile_context>

<pallas_src>
import functools

import numpy as np
import jax
import jax.numpy as jnp
from jax.experimental import pallas as pl
from jax.experimental.pallas import tpu as pltpu


def _round_up(x, m):
    return ((x + m - 1) // m) * m


# ----------------------------------------------------------------------------
# Kernel 1: fused MLP + LSTM input projection, tiled over rows (parallel).
#   refs = [x, (w, b) * n_mlp, w_ih_T, b_lstm, out]
# ----------------------------------------------------------------------------
def _proj_kernel(*refs, n_mlp):
    x_ref = refs[0]
    out_ref = refs[-1]
    h = x_ref[...].astype(jnp.float32)
    idx = 1
    for _ in range(n_mlp):
        w_ref, b_ref = refs[idx], refs[idx + 1]
        idx += 2
        y = jnp.dot(h.astype(jnp.bfloat16), w_ref[...],      # weights are bf16
                    preferred_element_type=jnp.float32)
        h = jnp.tanh(y + b_ref[...])                          # act_cls := nn.Tanh
    wih_ref, bih_ref = refs[idx], refs[idx + 1]
    g = jnp.dot(h.astype(jnp.bfloat16), wih_ref[...],
                preferred_element_type=jnp.float32)
    out_ref[...] = g + bih_ref[...]


def mlp_proj(x, params, *, n_mlp):
    """x: (M, F) batch-major rows -> gates_x: (M, 4H)."""
    M, F = x.shape
    G = params["wih"].shape[1]

    tile_m = min(256, _round_up(M, 8))
    M_pad = _round_up(M, tile_m)
    if M_pad != M:
        x = jnp.pad(x, ((0, M_pad - M), (0, 0)))

    weights = []
    for li in range(n_mlp):
        weights += [params[f"mlp{li}_w"], params[f"mlp{li}_b"]]
    weights += [params["wih"], params["b_lstm"]]

    in_specs = [pl.BlockSpec((tile_m, F), lambda i: (i, 0))]
    for w in weights:
        in_specs.append(pl.BlockSpec(tuple(w.shape), lambda i: (0, 0)))

    out = pl.pallas_call(
        functools.partial(_proj_kernel, n_mlp=n_mlp),
        out_shape=jax.ShapeDtypeStruct((M_pad, G), jnp.float32),
        grid=(M_pad // tile_m,),
        in_specs=in_specs,
        out_specs=pl.BlockSpec((tile_m, G), lambda i: (i, 0)),
        compiler_params=pltpu.CompilerParams(
            dimension_semantics=("parallel",),
            vmem_limit_bytes=32 * 1024 * 1024),
    )(x, *weights)
    return out[:M]


# ----------------------------------------------------------------------------
# Kernel 2: LSTM recurrence over T (sequential) + fused output head.
#   gates is a batch-major slab (Bseq, T*4H); the per-step block (Bseq, 4H)
#   at column-block t gathers time step t across all sequences.  Logits are
#   written to a (Bseq, T*Np) slab the same way (lane-dense, no transpose).
# ----------------------------------------------------------------------------
def _lstm_head_kernel(gx_ref, h0_ref, c0_ref, whh_ref, wout_ref, bout_ref,
                      y_ref, hN_ref, cN_ref, h_scr, c_scr, *, hidden):
    t = pl.program_id(0)

    @pl.when(t == 0)
    def _():
        h_scr[...] = h0_ref[...]
        c_scr[...] = c0_ref[...]

    h = h_scr[...]
    c = c_scr[...]
    H = hidden

    # gates = x_t @ W_ih^T + b  (precomputed)  +  h_{t-1} @ W_hh^T
    g = gx_ref[...] + jnp.dot(h.astype(jnp.bfloat16), whh_ref[...],
                              preferred_element_type=jnp.float32)
    i_g = jax.nn.sigmoid(g[:, 0 * H:1 * H])
    f_g = jax.nn.sigmoid(g[:, 1 * H:2 * H])
    g_g = jnp.tanh(g[:, 2 * H:3 * H])
    o_g = jax.nn.sigmoid(g[:, 3 * H:4 * H])

    c_new = f_g * c + i_g * g_g
    h_new = o_g * jnp.tanh(c_new)
    h_scr[...] = h_new
    c_scr[...] = c_new

    # fused output head (Linear(hidden, num_out), padded to lane-dense width)
    y_ref[...] = (jnp.dot(h_new.astype(jnp.bfloat16), wout_ref[...],
                          preferred_element_type=jnp.float32) + bout_ref[...])

    @pl.when(t == pl.num_programs(0) - 1)
    def _():
        hN_ref[...] = h_new
        cN_ref[...] = c_new


def lstm_head(gates_bm, h0, c0, params, *, hidden, T):
    """gates_bm: (Bseq, T*4H) -> (logits (Bseq, T*Np), h_T, c_T)."""
    Bseq = h0.shape[0]
    H = hidden
    G = 4 * H
    Np = params["wout"].shape[1]

    return pl.pallas_call(
        functools.partial(_lstm_head_kernel, hidden=H),
        out_shape=(jax.ShapeDtypeStruct((Bseq, T * Np), jnp.float32),
                   jax.ShapeDtypeStruct((Bseq, H), jnp.float32),
                   jax.ShapeDtypeStruct((Bseq, H), jnp.float32)),
        grid=(T,),
        in_specs=[
            pl.BlockSpec((Bseq, G), lambda t: (0, t)),    # gates_x, per step
            pl.BlockSpec((Bseq, H), lambda t: (0, 0)),    # h0 (loaded once)
            pl.BlockSpec((Bseq, H), lambda t: (0, 0)),    # c0
            pl.BlockSpec((H, G), lambda t: (0, 0)),       # W_hh^T (bf16)
            pl.BlockSpec((H, Np), lambda t: (0, 0)),      # W_out (bf16, padded)
            pl.BlockSpec((1, Np), lambda t: (0, 0)),      # b_out (padded)
        ],
        out_specs=(
            pl.BlockSpec((Bseq, Np), lambda t: (0, t)),   # logits, per step
            pl.BlockSpec((Bseq, H), lambda t: (0, 0)),    # h_T
            pl.BlockSpec((Bseq, H), lambda t: (0, 0)),    # c_T
        ),
        scratch_shapes=[pltpu.VMEM((Bseq, H), jnp.float32),
                        pltpu.VMEM((Bseq, H), jnp.float32)],
        compiler_params=pltpu.CompilerParams(
            dimension_semantics=("arbitrary",),
            vmem_limit_bytes=32 * 1024 * 1024),
    )(gates_bm, h0, c0, params["whh"], params["wout"], params["bout"])


# ----------------------------------------------------------------------------
# Parameter init, mirroring the spec's init scheme:
#   - init_modules() does not recurse, so MLP Linear / LSTM keep torch defaults
#   - the final Linear gets xavier_uniform weights and bias = 0.01
# Weights are stored pre-transposed ((in, out) layout) and in bf16 (cast once
# here instead of per kernel invocation); biases stay f32.
# ----------------------------------------------------------------------------
def init_params(key, num_inp, num_out, hiddens):
    H = hiddens[-1]
    mlp_sizes = [num_inp] + list(hiddens[:-1])
    params = {}
    keys = iter(jax.random.split(key, 4 + 2 * len(mlp_sizes)))

    for li, (fi, fo) in enumerate(zip(mlp_sizes[:-1], mlp_sizes[1:])):
        bound = 1.0 / float(np.sqrt(fi))                 # torch Linear default
        params[f"mlp{li}_w"] = jax.random.uniform(
            next(keys), (fi, fo), jnp.float32, -bound, bound).astype(jnp.bfloat16)
        params[f"mlp{li}_b"] = jax.random.uniform(
            next(keys), (1, fo), jnp.float32, -bound, bound)

    lstm_in = mlp_sizes[-1] if len(mlp_sizes) > 1 else num_inp
    k = 1.0 / float(np.sqrt(H))                          # torch LSTM default
    params["wih"] = jax.random.uniform(next(keys), (lstm_in, 4 * H),
                                       jnp.float32, -k, k).astype(jnp.bfloat16)
    params["whh"] = jax.random.uniform(next(keys), (H, 4 * H),
                                       jnp.float32, -k, k).astype(jnp.bfloat16)
    kb = jax.random.split(next(keys))
    b_ih = jax.random.uniform(kb[0], (4 * H,), jnp.float32, -k, k)
    b_hh = jax.random.uniform(kb[1], (4 * H,), jnp.float32, -k, k)
    params["b_lstm"] = (b_ih + b_hh).reshape(1, 4 * H)   # biases fused

    # final Linear, padded to a lane-dense (multiple of 128) output width
    Np = _round_up(max(num_out, 1), 128)
    bound = float(np.sqrt(6.0 / (H + num_out)))          # xavier_uniform
    w = jax.random.uniform(next(keys), (H, num_out), jnp.float32, -bound, bound)
    params["wout"] = (jnp.zeros((H, Np), jnp.float32)
                      .at[:, :num_out].set(w).astype(jnp.bfloat16))
    params["bout"] = jnp.zeros((1, Np), jnp.float32).at[:, :num_out].set(0.01)
    return params


# ----------------------------------------------------------------------------
# Forward pass == LSTMNet.forward (time_major=False, dropout_pct=0)
# ----------------------------------------------------------------------------
def make_forward(num_inp, num_out, hiddens):
    H = hiddens[-1]
    n_mlp = len(hiddens) - 1
    # TODO(synk): nn.Dropout (dropout_pct > 0) and the time_major=True path of
    # add_time_dimension are not implemented (demo uses dropout_pct=0,
    # time_major=False, the standard RLlib configuration).

    @jax.jit
    def forward(x, state, seq_lens, params):
        h0, c0 = state[0], state[1]
        Bseq = seq_lens.shape[0]
        BT, F = x.shape
        T = BT // Bseq
        Np = params["wout"].shape[1]

        gates = mlp_proj(x, params, n_mlp=n_mlp)             # (B*T, 4H)
        gates = gates.reshape(Bseq, T * 4 * H)                # free reshape

        y, h_n, c_n = lstm_head(gates, h0, c0, params, hidden=H, T=T)

        # (Bseq, T*Np) -> (B*T, Np) is a free reshape (batch-major row order,
        # matching emb.view(batch_size, -1)); then drop the lane padding.
        logits = y.reshape(BT, Np)[:, :num_out]
        return logits, [h_n, c_n]

    return forward


# ----------------------------------------------------------------------------
# Pure-JAX reference (f32 math on the same bf16-quantised weights).
# ----------------------------------------------------------------------------
def reference_forward(x, state, seq_lens, params, num_out, hiddens):
    H = hiddens[-1]
    Bseq = seq_lens.shape[0]
    BT, _ = x.shape
    T = BT // Bseq

    h = x
    for li in range(len(hiddens) - 1):
        h = jnp.tanh(h @ params[f"mlp{li}_w"].astype(jnp.float32)
                     + params[f"mlp{li}_b"])
    x_t = jnp.transpose(h.reshape(Bseq, T, -1), (1, 0, 2))   # (T, B, F)

    wih = params["wih"].astype(jnp.float32)
    whh = params["whh"].astype(jnp.float32)

    def step(carry, xt):
        hh, cc = carry
        g = xt @ wih + hh @ whh + params["b_lstm"][0]
        i = jax.nn.sigmoid(g[:, :H])
        f = jax.nn.sigmoid(g[:, H:2 * H])
        gg = jnp.tanh(g[:, 2 * H:3 * H])
        o = jax.nn.sigmoid(g[:, 3 * H:4 * H])
        cc = f * cc + i * gg
        hh = o * jnp.tanh(cc)
        return (hh, cc), hh

    (h_n, c_n), hs = jax.lax.scan(step, (state[0], state[1]), x_t)
    emb = jnp.transpose(hs, (1, 0, 2)).reshape(BT, H)
    logits = (emb @ params["wout"].astype(jnp.float32)[:, :num_out]
              + params["bout"][0, :num_out])
    return logits, [h_n, c_n]


if __name__ == "__main__":
    # Small deterministic config: 2 sequences x 8 timesteps, 16 input features,
    # hiddens = [64, 32] (-> one MLP layer + LSTM(64, 32)), 6 outputs.
    num_inp, num_out = 16, 6
    hiddens = [64, 32]
    Bseq, T = 2, 8
    H = hiddens[-1]

    key = jax.random.PRNGKey(0)
    kx, kp = jax.random.split(key)
    x = jax.random.normal(kx, (Bseq * T, num_inp), jnp.float32)
    seq_lens = jnp.full((Bseq,), T, jnp.int32)
    # get_initial_state(): zeros
    state = [jnp.zeros((Bseq, H), jnp.float32), jnp.zeros((Bseq, H), jnp.float32)]

    params = init_params(kp, num_inp, num_out, hiddens)

    forward = make_forward(num_inp, num_out, hiddens)
    logits, state_out = forward(x, state, seq_lens, params)
    jax.block_until_ready((logits, state_out))

    assert logits.shape == (Bseq * T, num_out), logits.shape
    assert state_out[0].shape == (Bseq, H) and state_out[1].shape == (Bseq, H)
    assert logits.dtype == jnp.float32
    assert bool(jnp.all(jnp.isfinite(logits)))
    assert bool(jnp.all(jnp.isfinite(state_out[0])))
    assert bool(jnp.all(jnp.isfinite(state_out[1])))

    ref_logits, ref_state = reference_forward(x, state, seq_lens, params,
                                              num_out, hiddens)
    np.testing.assert_allclose(np.asarray(logits), np.asarray(ref_logits),
                               rtol=1e-1, atol=1e-1)
    np.testing.assert_allclose(np.asarray(state_out[0]), np.asarray(ref_state[0]),
                               rtol=1e-1, atol=1e-1)
    np.testing.assert_allclose(np.asarray(state_out[1]), np.asarray(ref_state[1]),
                               rtol=1e-1, atol=1e-1)

    print("KERNEL_OK")
</pallas_src>

<mosaic_0001>
module attributes {stable_mosaic.version = 11 : i64} {
  func.func @_proj_kernel(%arg0: i32, %arg1: memref<16x16xf32, #tpu.memory_space<vmem>>, %arg2: memref<16x64xbf16, #tpu.memory_space<vmem>>, %arg3: memref<1x64xf32, #tpu.memory_space<vmem>>, %arg4: memref<64x128xbf16, #tpu.memory_space<vmem>>, %arg5: memref<1x128xf32, #tpu.memory_space<vmem>>, %arg6: memref<16x128xf32, #tpu.memory_space<vmem>>) attributes {dimension_semantics = [#tpu.dimension_semantics<parallel>], iteration_bounds = array<i64: 1>, scalar_prefetch = 0 : i64, scratch_operands = 0 : i64, tpu.core_type = #tpu.core_type<tc>, window_params = [{transform_indices = @transform_0, window_bounds = array<i64: 16, 16>}, {pipeline_mode = #tpu.pipeline_mode<synchronous>, transform_indices = @transform_1, window_bounds = array<i64: 16, 64>}, {pipeline_mode = #tpu.pipeline_mode<synchronous>, transform_indices = @transform_2, window_bounds = array<i64: 1, 64>}, {pipeline_mode = #tpu.pipeline_mode<synchronous>, transform_indices = @transform_3, window_bounds = array<i64: 64, 128>}, {pipeline_mode = #tpu.pipeline_mode<synchronous>, transform_indices = @transform_4, window_bounds = array<i64: 1, 128>}, {transform_indices = @transform_5, window_bounds = array<i64: 16, 128>}]} {
    %c0 = arith.constant 0 : index
    %c0_0 = arith.constant 0 : index
    %0 = vector.load %arg1[%c0, %c0_0] : memref<16x16xf32, #tpu.memory_space<vmem>>, vector<16x16xf32>
    %1 = arith.truncf %0 : vector<16x16xf32> to vector<16x16xbf16>
    %c0_1 = arith.constant 0 : index
    %c0_2 = arith.constant 0 : index
    %2 = vector.load %arg2[%c0_1, %c0_2] : memref<16x64xbf16, #tpu.memory_space<vmem>>, vector<16x64xbf16>
    %cst = arith.constant dense<0.000000e+00> : vector<16x64xf32>
    %3 = tpu.matmul %1, %2, %cst {dimension_numbers = #tpu.dot_dimension_numbers<[1], [0], [0], [1], [0, 0, 1, 1], [], []>} : vector<16x16xbf16>, vector<16x64xbf16>, vector<16x64xf32> -> vector<16x64xf32>
    %c0_3 = arith.constant 0 : index
    %c0_4 = arith.constant 0 : index
    %4 = vector.load %arg3[%c0_3, %c0_4] : memref<1x64xf32, #tpu.memory_space<vmem>>, vector<1x64xf32>
    %5 = vector.broadcast %4 : vector<1x64xf32> to vector<16x64xf32>
    %6 = arith.addf %3, %5 : vector<16x64xf32>
    %7 = math.tanh %6 : vector<16x64xf32>
    %8 = arith.truncf %7 : vector<16x64xf32> to vector<16x64xbf16>
    %c0_5 = arith.constant 0 : index
    %c0_6 = arith.constant 0 : index
    %9 = vector.load %arg4[%c0_5, %c0_6] : memref<64x128xbf16, #tpu.memory_space<vmem>>, vector<64x128xbf16>
    %cst_7 = arith.constant dense<0.000000e+00> : vector<16x128xf32>
    %10 = tpu.matmul %8, %9, %cst_7 {dimension_numbers = #tpu.dot_dimension_numbers<[1], [0], [0], [1], [0, 0, 1, 1], [], []>} : vector<16x64xbf16>, vector<64x128xbf16>, vector<16x128xf32> -> vector<16x128xf32>
    %c0_8 = arith.constant 0 : index
    %c0_9 = arith.constant 0 : index
    %11 = vector.load %arg5[%c0_8, %c0_9] : memref<1x128xf32, #tpu.memory_space<vmem>>, vector<1x128xf32>
    %12 = vector.broadcast %11 : vector<1x128xf32> to vector<16x128xf32>
    %13 = arith.addf %10, %12 : vector<16x128xf32>
    %c0_10 = arith.constant 0 : index
    %c0_11 = arith.constant 0 : index
    %14 = vector.load %arg6[%c0_10, %c0_11] : memref<16x128xf32, #tpu.memory_space<vmem>>, vector<16x128xf32>
    tpu.vector_store %arg6[%c0_10, %c0_11], %13 {strides = array<i32>} : memref<16x128xf32, #tpu.memory_space<vmem>>, vector<16x128xf32>,
    return
  }
  func.func @transform_0(%arg0: i32) -> (i32, i32) {
    %c0_i32 = arith.constant 0 : i32
    %c0_i32_0 = arith.constant 0 : i32
    return %arg0, %c0_i32 : i32, i32
  }
  func.func @transform_1(%arg0: i32) -> (i32, i32) {
    %c0_i32 = arith.constant 0 : i32
    %c0_i32_0 = arith.constant 0 : i32
    %c0_i32_1 = arith.constant 0 : i32
    return %c0_i32, %c0_i32_0 : i32, i32
  }
  func.func @transform_2(%arg0: i32) -> (i32, i32) {
    %c0_i32 = arith.constant 0 : i32
    %c0_i32_0 = arith.constant 0 : i32
    %c0_i32_1 = arith.constant 0 : i32
    return %c0_i32, %c0_i32_0 : i32, i32
  }
  func.func @transform_3(%arg0: i32) -> (i32, i32) {
    %c0_i32 = arith.constant 0 : i32
    %c0_i32_0 = arith.constant 0 : i32
    %c0_i32_1 = arith.constant 0 : i32
    return %c0_i32, %c0_i32_0 : i32, i32
  }
  func.func @transform_4(%arg0: i32) -> (i32, i32) {
    %c0_i32 = arith.constant 0 : i32
    %c0_i32_0 = arith.constant 0 : i32
    %c0_i32_1 = arith.constant 0 : i32
    return %c0_i32, %c0_i32_0 : i32, i32
  }
  func.func @transform_5(%arg0: i32) -> (i32, i32) {
    %c0_i32 = arith.constant 0 : i32
    %c0_i32_0 = arith.constant 0 : i32
    return %arg0, %c0_i32 : i32, i32
  }
}

module attributes {stable_mosaic.version = 11 : i64} {
  func.func @_lstm_head_kernel(%arg0: i32, %arg1: memref<2x128xf32, #tpu.memory_space<vmem>>, %arg2: memref<2x32xf32, #tpu.memory_space<vmem>>, %arg3: memref<2x32xf32, #tpu.memory_space<vmem>>, %arg4: memref<32x128xbf16, #tpu.memory_space<vmem>>, %arg5: memref<32x128xbf16, #tpu.memory_space<vmem>>, %arg6: memref<1x128xf32, #tpu.memory_space<vmem>>, %arg7: memref<2x128xf32, #tpu.memory_space<vmem>>, %arg8: memref<2x32xf32, #tpu.memory_space<vmem>>, %arg9: memref<2x32xf32, #tpu.memory_space<vmem>>, %arg10: memref<2x32xf32, #tpu.memory_space<vmem>>, %arg11: memref<2x32xf32, #tpu.memory_space<vmem>>) attributes {dimension_semantics = [#tpu.dimension_semantics<arbitrary>], iteration_bounds = array<i64: 8>, scalar_prefetch = 0 : i64, scratch_operands = 2 : i64, tpu.core_type = #tpu.core_type<tc>, window_params = [{transform_indices = @transform_0, window_bounds = array<i64: 2, 128>}, {pipeline_mode = #tpu.pipeline_mode<synchronous>, transform_indices = @transform_1, window_bounds = array<i64: 2, 32>}, {pipeline_mode = #tpu.pipeline_mode<synchronous>, transform_indices = @transform_2, window_bounds = array<i64: 2, 32>}, {pipeline_mode = #tpu.pipeline_mode<synchronous>, transform_indices = @transform_3, window_bounds = array<i64: 32, 128>}, {pipeline_mode = #tpu.pipeline_mode<synchronous>, transform_indices = @transform_4, window_bounds = array<i64: 32, 128>}, {pipeline_mode = #tpu.pipeline_mode<synchronous>, transform_indices = @transform_5, window_bounds = array<i64: 1, 128>}, {transform_indices = @transform_6, window_bounds = array<i64: 2, 128>}, {pipeline_mode = #tpu.pipeline_mode<synchronous>, transform_indices = @transform_7, window_bounds = array<i64: 2, 32>}, {pipeline_mode = #tpu.pipeline_mode<synchronous>, transform_indices = @transform_8, window_bounds = array<i64: 2, 32>}]} {
    %c0_i32 = arith.constant 0 : i32
    %0 = arith.cmpi eq, %arg0, %c0_i32 : i32
    %1 = arith.extui %0 : i1 to i32
    %c0_i32_0 = arith.constant 0 : i32
    %2 = arith.cmpi ne, %1, %c0_i32_0 : i32
    scf.if %2 {
      %c0_23 = arith.constant 0 : index
      %c0_24 = arith.constant 0 : index
      %47 = vector.load %arg2[%c0_23, %c0_24] : memref<2x32xf32, #tpu.memory_space<vmem>>, vector<2x32xf32>
      %c0_25 = arith.constant 0 : index
      %c0_26 = arith.constant 0 : index
      %48 = vector.load %arg10[%c0_25, %c0_26] : memref<2x32xf32, #tpu.memory_space<vmem>>, vector<2x32xf32>
      tpu.vector_store %arg10[%c0_25, %c0_26], %47 {strides = array<i32>} : memref<2x32xf32, #tpu.memory_space<vmem>>, vector<2x32xf32>,
      %c0_27 = arith.constant 0 : index
      %c0_28 = arith.constant 0 : index
      %49 = vector.load %arg3[%c0_27, %c0_28] : memref<2x32xf32, #tpu.memory_space<vmem>>, vector<2x32xf32>
      %c0_29 = arith.constant 0 : index
      %c0_30 = arith.constant 0 : index
      %50 = vector.load %arg11[%c0_29, %c0_30] : memref<2x32xf32, #tpu.memory_space<vmem>>, vector<2x32xf32>
      tpu.vector_store %arg11[%c0_29, %c0_30], %49 {strides = array<i32>} : memref<2x32xf32, #tpu.memory_space<vmem>>, vector<2x32xf32>,
    } else {
    }
    %c0 = arith.constant 0 : index
    %c0_1 = arith.constant 0 : index
    %3 = vector.load %arg10[%c0, %c0_1] : memref<2x32xf32, #tpu.memory_space<vmem>>, vector<2x32xf32>
    %c0_2 = arith.constant 0 : index
    %c0_3 = arith.constant 0 : index
    %4 = vector.load %arg11[%c0_2, %c0_3] : memref<2x32xf32, #tpu.memory_space<vmem>>, vector<2x32xf32>
    %c0_4 = arith.constant 0 : index
    %c0_5 = arith.constant 0 : index
    %5 = vector.load %arg1[%c0_4, %c0_5] : memref<2x128xf32, #tpu.memory_space<vmem>>, vector<2x128xf32>
    %6 = arith.truncf %3 : vector<2x32xf32> to vector<2x32xbf16>
    %c0_6 = arith.constant 0 : index
    %c0_7 = arith.constant 0 : index
    %7 = vector.load %arg4[%c0_6, %c0_7] : memref<32x128xbf16, #tpu.memory_space<vmem>>, vector<32x128xbf16>
    %cst = arith.constant dense<0.000000e+00> : vector<2x128xf32>
    %8 = tpu.matmul %6, %7, %cst {dimension_numbers = #tpu.dot_dimension_numbers<[1], [0], [0], [1], [0, 0, 1, 1], [], []>} : vector<2x32xbf16>, vector<32x128xbf16>, vector<2x128xf32> -> vector<2x128xf32>
    %9 = arith.addf %5, %8 : vector<2x128xf32>
    %10 = vector.extract_strided_slice %9 {offsets = [0, 0], sizes = [2, 32], strides = [1, 1]} : vector<2x128xf32> to vector<2x32xf32>
    %11 = arith.negf %10 : vector<2x32xf32>
    %12 = math.exp %11 : vector<2x32xf32>
    %cst_8 = arith.constant 1.000000e+00 : f32
    %13 = vector.broadcast %cst_8 : f32 to vector<2x32xf32>
    %14 = arith.addf %13, %12 : vector<2x32xf32>
    %15 = arith.divf %13, %14 : vector<2x32xf32>
    %16 = vector.extract_strided_slice %9 {offsets = [0, 32], sizes = [2, 32], strides = [1, 1]} : vector<2x128xf32> to vector<2x32xf32>
    %17 = arith.negf %16 : vector<2x32xf32>
    %18 = math.exp %17 : vector<2x32xf32>
    %cst_9 = arith.constant 1.000000e+00 : f32
    %19 = vector.broadcast %cst_9 : f32 to vector<2x32xf32>
    %20 = arith.addf %19, %18 : vector<2x32xf32>
    %21 = arith.divf %19, %20 : vector<2x32xf32>
    %22 = vector.extract_strided_slice %9 {offsets = [0, 64], sizes = [2, 32], strides = [1, 1]} : vector<2x128xf32> to vector<2x32xf32>
    %23 = math.tanh %22 : vector<2x32xf32>
    %24 = vector.extract_strided_slice %9 {offsets = [0, 96], sizes = [2, 32], strides = [1, 1]} : vector<2x128xf32> to vector<2x32xf32>
    %25 = arith.negf %24 : vector<2x32xf32>
    %26 = math.exp %25 : vector<2x32xf32>
    %cst_10 = arith.constant 1.000000e+00 : f32
    %27 = vector.broadcast %cst_10 : f32 to vector<2x32xf32>
    %28 = arith.addf %27, %26 : vector<2x32xf32>
    %29 = arith.divf %27, %28 : vector<2x32xf32>
    %30 = arith.mulf %21, %4 : vector<2x32xf32>
    %31 = arith.mulf %15, %23 : vector<2x32xf32>
    %32 = arith.addf %30, %31 : vector<2x32xf32>
    %33 = math.tanh %32 : vector<2x32xf32>
    %34 = arith.mulf %29, %33 : vector<2x32xf32>
    %c0_11 = arith.constant 0 : index
    %c0_12 = arith.constant 0 : index
    %35 = vector.load %arg10[%c0_11, %c0_12] : memref<2x32xf32, #tpu.memory_space<vmem>>, vector<2x32xf32>
    tpu.vector_store %arg10[%c0_11, %c0_12], %34 {strides = array<i32>} : memref<2x32xf32, #tpu.memory_space<vmem>>, vector<2x32xf32>,
    %c0_13 = arith.constant 0 : index
    %c0_14 = arith.constant 0 : index
    %36 = vector.load %arg11[%c0_13, %c0_14] : memref<2x32xf32, #tpu.memory_space<vmem>>, vector<2x32xf32>
    tpu.vector_store %arg11[%c0_13, %c0_14], %32 {strides = array<i32>} : memref<2x32xf32, #tpu.memory_space<vmem>>, vector<2x32xf32>,
    %37 = arith.truncf %34 : vector<2x32xf32> to vector<2x32xbf16>
    %c0_15 = arith.constant 0 : index
    %c0_16 = arith.constant 0 : index
    %38 = vector.load %arg5[%c0_15, %c0_16] : memref<32x128xbf16, #tpu.memory_space<vmem>>, vector<32x128xbf16>
    %cst_17 = arith.constant dense<0.000000e+00> : vector<2x128xf32>
    %39 = tpu.matmul %37, %38, %cst_17 {dimension_numbers = #tpu.dot_dimension_numbers<[1], [0], [0], [1], [0, 0, 1, 1], [], []>} : vector<2x32xbf16>, vector<32x128xbf16>, vector<2x128xf32> -> vector<2x128xf32>
    %c0_18 = arith.constant 0 : index
    %c0_19 = arith.constant 0 : index
    %40 = vector.load %arg6[%c0_18, %c0_19] : memref<1x128xf32, #tpu.memory_space<vmem>>, vector<1x128xf32>
    %41 = vector.broadcast %40 : vector<1x128xf32> to vector<2x128xf32>
    %42 = arith.addf %39, %41 : vector<2x128xf32>
    %c0_20 = arith.constant 0 : index
    %c0_21 = arith.constant 0 : index
    %43 = vector.load %arg7[%c0_20, %c0_21] : memref<2x128xf32, #tpu.memory_space<vmem>>, vector<2x128xf32>
    tpu.vector_store %arg7[%c0_20, %c0_21], %42 {strides = array<i32>} : memref<2x128xf32, #tpu.memory_space<vmem>>, vector<2x128xf32>,
    %c7_i32 = arith.constant 7 : i32
    %44 = arith.cmpi eq, %arg0, %c7_i32 : i32
    %45 = arith.extui %44 : i1 to i32
    %c0_i32_22 = arith.constant 0 : i32
    %46 = arith.cmpi ne, %45, %c0_i32_22 : i32
    scf.if %46 {
      %c0_23 = arith.constant 0 : index
      %c0_24 = arith.constant 0 : index
      %47 = vector.load %arg8[%c0_23, %c0_24] : memref<2x32xf32, #tpu.memory_space<vmem>>, vector<2x32xf32>
      tpu.vector_store %arg8[%c0_23, %c0_24], %34 {strides = array<i32>} : memref<2x32xf32, #tpu.memory_space<vmem>>, vector<2x32xf32>,
      %c0_25 = arith.constant 0 : index
      %c0_26 = arith.constant 0 : index
      %48 = vector.load %arg9[%c0_25, %c0_26] : memref<2x32xf32, #tpu.memory_space<vmem>>, vector<2x32xf32>
      tpu.vector_store %arg9[%c0_25, %c0_26], %32 {strides = array<i32>} : memref<2x32xf32, #tpu.memory_space<vmem>>, vector<2x32xf32>,
    } else {
    }
    return
  }
  func.func @transform_0(%arg0: i32) -> (i32, i32) {
    %c0_i32 = arith.constant 0 : i32
    %c0_i32_0 = arith.constant 0 : i32
    return %c0_i32, %arg0 : i32, i32
  }
  func.func @transform_1(%arg0: i32) -> (i32, i32) {
    %c0_i32 = arith.constant 0 : i32
    %c0_i32_0 = arith.constant 0 : i32
    %c0_i32_1 = arith.constant 0 : i32
    return %c0_i32, %c0_i32_0 : i32, i32
  }
  func.func @transform_2(%arg0: i32) -> (i32, i32) {
    %c0_i32 = arith.constant 0 : i32
    %c0_i32_0 = arith.constant 0 : i32
    %c0_i32_1 = arith.constant 0 : i32
    return %c0_i32, %c0_i32_0 : i32, i32
  }
  func.func @transform_3(%arg0: i32) -> (i32, i32) {
    %c0_i32 = arith.constant 0 : i32
    %c0_i32_0 = arith.constant 0 : i32
    %c0_i32_1 = arith.constant 0 : i32
    return %c0_i32, %c0_i32_0 : i32, i32
  }
  func.func @transform_4(%arg0: i32) -> (i32, i32) {
    %c0_i32 = arith.constant 0 : i32
    %c0_i32_0 = arith.constant 0 : i32
    %c0_i32_1 = arith.constant 0 : i32
    return %c0_i32, %c0_i32_0 : i32, i32
  }
  func.func @transform_5(%arg0: i32) -> (i32, i32) {
    %c0_i32 = arith.constant 0 : i32
    %c0_i32_0 = arith.constant 0 : i32
    %c0_i32_1 = arith.constant 0 : i32
    return %c0_i32, %c0_i32_0 : i32, i32
  }
  func.func @transform_6(%arg0: i32) -> (i32, i32) {
    %c0_i32 = arith.constant 0 : i32
    %c0_i32_0 = arith.constant 0 : i32
    return %c0_i32, %arg0 : i32, i32
  }
  func.func @transform_7(%arg0: i32) -> (i32, i32) {
    %c0_i32 = arith.constant 0 : i32
    %c0_i32_0 = arith.constant 0 : i32
    %c0_i32_1 = arith.constant 0 : i32
    return %c0_i32, %c0_i32_0 : i32, i32
  }
  func.func @transform_8(%arg0: i32) -> (i32, i32) {
    %c0_i32 = arith.constant 0 : i32
    %c0_i32_0 = arith.constant 0 : i32
    %c0_i32_1 = arith.constant 0 : i32
    return %c0_i32, %c0_i32_0 : i32, i32
  }
}

</mosaic_0001>

<bundles_post_ra>
// kernel: forward.2
= control target key start
LH: loop header
LB: loop body
LE: loop exit
PB: predicated region body
PF: predicated region fallthrough
CT: control target
= control target key end

     0   :  { %10 = vsyncpa [#allocation3], 0  ;;  %s383_s0 = inlined_call_operand.hbm [shape: f32[16,16], index: 0, kind: input, shape index: {}]   ;;  %s384_s1 = inlined_call_operand.vmem [shape: bf16[16,64], index: 1, kind: input, shape index: {}]   ;;  %s385_s2 = inlined_call_operand.vmem [shape: f32[1,64], index: 2, kind: input, shape index: {}]   ;;  %s386_s3 = inlined_call_operand.hbm [shape: bf16[64,128], index: 3, kind: input, shape index: {}]   ;;  %s387_s4 = inlined_call_operand.vmem [shape: f32[1,128], index: 4, kind: input, shape index: {}]   ;;  %s388_s5 = inlined_call_operand.vmem [shape: f32[16,128], index: 5, kind: output, shape index: {}]  }
   0x1   :  { %11 = vsyncpa [#allocation5], 0  ;;  %s306_s18 = smov [#allocation2]   ;;  %s258_s22 = scalar_lea.hbm %s383_s0, 256 }
   0x2   :  { %s17_s19 = sshll.u32 %s306_s18, 4  ;;  %p259_p0 = scmp.ne.s32.totalorder %s383_s0, %s258_s22  ;;  %s18_s19 = int_to_ptr.vmem [resolvable:$true] %s17_s19 }
   0x3   :  { %p262_p1 = scmp.lt.u32.totalorder %s258_s22, %s383_s0 }
   0x5   :  { %p264_p2 = pnand %p262_p1, %p259_p0 }
   0x7   :  { %267 = shalt.err (!%p264_p2)
}
   0x8   :  { %s268_s27 = scalar_lea.vmem %s18_s19, 256  ;;  %p273_p4 = scmp.lt.s32.totalorder %s18_s19, %s18_s19 }
   0x9   :  { %p269_p3 = scmp.ne.s32.totalorder %s18_s19, %s268_s27  ;;  %p274_p5 = scmp.lt.s32.totalorder %s268_s27, %s268_s27 }
   0xb   :  { %p275_p6 = por %p274_p5, %p273_p4 }
   0xd   :  { %p276_p7 = pnand %p275_p6, %p269_p3 }
   0xf   :  { %279 = shalt.err (!%p276_p7)
}
  0x10   :  { %s307_s28 = smov 128   ;;  %s308_s29 = smov 8  }
  0x11   :  { %23 = dma.hbm_to_vmem [thread:$0]  %s383_s0, 256, %s18_s19, [#allocation3], %s307_s28, %s307_s28, %s308_s29  }
  0x12   :  { %s309_s7 = smov [#allocation4]   ;;  %s280_s11 = scalar_lea.hbm %s386_s3, 512 }
  0x13   :  { %s33_s8 = sshll.u32 %s309_s7, 4  ;;  %p281_p8 = scmp.ne.s32.totalorder %s386_s3, %s280_s11  ;;  %s34_s8 = int_to_ptr.vmem [resolvable:$true] %s33_s8 }
  0x14   :  { %p284_p9 = scmp.lt.u32.totalorder %s280_s11, %s386_s3 }
  0x16   :  { %p286_p10 = pnand %p284_p9, %p281_p8 }
  0x18   :  { %289 = shalt.err (!%p286_p10)
}
  0x19   :  { %s290_s16 = scalar_lea.vmem %s34_s8, 512  ;;  %p295_p12 = scmp.lt.s32.totalorder %s34_s8, %s34_s8 }
  0x1a   :  { %p291_p11 = scmp.ne.s32.totalorder %s34_s8, %s290_s16  ;;  %p296_p13 = scmp.lt.s32.totalorder %s290_s16, %s290_s16 }
  0x1c   :  { %p297_p0 = por %p296_p13, %p295_p12 }
  0x1e   :  { %p298_p1 = pnand %p297_p0, %p291_p11 }
  0x20   :  { %301 = shalt.err (!%p298_p1)
}
  0x21   :  { %s310_s0 = smov 64   ;;  %s311_s17 = smov 4  }
  0x22   :  { %39 = dma.hbm_to_vmem [thread:$0]  %s386_s3, 512, %s34_s8, [#allocation5], %s310_s0, %s310_s0, %s311_s17  }
  0x23   :  { %302 = dma.done.wait [#allocation3], 256  }
  0x24   :  { %303 = vsyncadd [#allocation3], 4294967040 }
  0x25   :  { %304 = dma.done.wait [#allocation5], 512  }
  0x26   :  { %305 = vsyncadd [#allocation5], 4294966784  ;;  %v312_v0 = vmov 0.0   ;;  %vm313_vm0 = vmmov 0   ;;  %v249_v1 = vld [vmem:[%s384_s1] sm:$0xff]   ;;  %v50_v3 = vld [vmem:[#allocation2 + $0x8] sm:$0xff] }
  0x27   :  { %223 = vmatprep.subr.bf16.mxu0 %v312_v0  ;;  %225 = vmatprep.mubr.msk.bf16.mxu0 %vm313_vm0, %v312_v0  ;;  %v49_v2 = vld [vmem:[#allocation2] sm:$0xff]  ;;  %vm67_vm1 = vcmask 130048   ;;  %v250_v5 = vld [vmem:[#allocation4] sm:$0xff]   ;;  %v251_v6 = vld [vmem:[#allocation4 + $0x8] sm:$0xff]   ;;  %vm154_vm2 = vcmask 523264  }
  0x28   :  { %229 = vmatprep.subr.bf16.mxu1 %v312_v0  ;;  %237 = vmatprep.mubr.msk.bf16.mxu1 %vm313_vm0, %v312_v0  ;;  %v51_v4 = vpack.c.bf16 %v50_v3, %v49_v2  ;;  %v252_v7 = vld [vmem:[#allocation4 + $0x10] sm:$0xff]   ;;  %v253_v8 = vld [vmem:[#allocation4 + $0x18] sm:$0xff]  }
  0x29   :  { %224 = vmatpush3.bf16.msra.mxu0 %v249_v1  ;;  %230 = vmatpush3.bf16.msra.mxu1 %v250_v5  ;;  %v207_v9 = vld [vmem:[%s385_s2] ss:$0 sm:$0xff] }
  0x2a   :  { %231 = vmatprep.subr.bf16.mxu1 %v312_v0  ;;  %v210_v19 = vld [vmem:[%s387_s4] ss:$0 sm:$0xff] }
  0x2c   :  { %226 = vmatmul.mubr.msk.bf16.vlgmr.msra.gmra.mrb[0].mxu0 %vm67_vm1, %v51_v4 }
  0x2d   :  { %232 = vmatpush3.bf16.msra.mxu1 %v251_v6 }
  0x2e   :  { %233 = vmatprep.subr.bf16.mxu1 %v312_v0 }
  0x31   :  { %234 = vmatpush3.bf16.msra.mxu1 %v252_v7 }
  0x32   :  { %235 = vmatprep.subr.bf16.mxu1 %v312_v0 }
  0x35   :  { %236 = vmatpush3.bf16.msra.mxu1 %v253_v8 }
  0xff   :  { %v105_v10 = vpop.f32.mrb[0].mxu0 }
 0x100   :  { %v106_v11 = vadd.f32 %v207_v9, %v105_v10  ;;  %v227_v12 = vpop.f32.mrb[1].mxu0 }
 0x101   :  { %v108_v13 = vpop.f32.mrb[2].mxu0 }
 0x102   :  { %v109_v14 = vadd.f32 %v207_v9, %v108_v13  ;;  %v228_v15 = vpop.f32.mrb[3].mxu0  ;;  %254 = vtanh.f32 %v106_v11 }
 0x104   :  { %256 = vtanh.f32 %v109_v14 }
 0x10c   :  { %v255_v16 = vpop.eup %254 }
 0x10e   :  { %v257_v17 = vpop.eup %256 }
 0x10f   :  { %v114_v18 = vpack.c.bf16 %v257_v17, %v255_v16 }
 0x111   :  { %238 = vmatmul.mubr.msk.bf16.vlgmr.msra.gmra.mrb[0].mxu1 %vm154_vm2, %v114_v18 }
 0x1e4   :  { %v192_v20 = vpop.f32.mrb[0].mxu1 }
 0x1e5   :  { %v193_v21 = vadd.f32 %v210_v19, %v192_v20  ;;  %v239_v22 = vpop.f32.mrb[1].mxu1 }
 0x1e6   :  { %v195_v23 = vpop.f32.mrb[2].mxu1 }
 0x1e7   :  { %199 = vst [vmem:[%s388_s5] sm:$0xff] %v193_v21  ;;  %v196_v24 = vadd.f32 %v210_v19, %v195_v23  ;;  %v240_v25 = vpop.f32.mrb[3].mxu1 }
 0x1e9   :  { %200 = vst [vmem:[%s388_s5 + $0x8] sm:$0xff] %v196_v24 }
 0x1ea   :  { %205 = vsyncpa [#allocation3], 1 }
 0x1eb   :  { %206 = vsyncpa [#allocation5], 1 }

// kernel: forward.3
= control target key start
LH: loop header
LB: loop body
LE: loop exit
PB: predicated region body
PF: predicated region fallthrough
CT: control target
= control target key end

     0   :  { %14 = vsyncpa [#allocation5], 0  ;;  %s890_s0 = inlined_call_operand.vmem [shape: f32[2,1024], index: 0, kind: input, shape index: {}]   ;;  %s891_s1 = inlined_call_operand.vmem [shape: f32[2,32], index: 1, kind: input, shape index: {}]   ;;  %s892_s2 = inlined_call_operand.vmem [shape: f32[2,32], index: 2, kind: input, shape index: {}]   ;;  %s893_s3 = inlined_call_operand.vmem [shape: bf16[32,128], index: 3, kind: input, shape index: {}]   ;;  %s894_s4 = inlined_call_operand.vmem [shape: bf16[32,128], index: 4, kind: input, shape index: {}]   ;;  %s895_s5 = inlined_call_operand.vmem [shape: f32[1,128], index: 5, kind: input, shape index: {}]   ;;  %s896_s6 = inlined_call_operand.vmem [shape: f32[2,1024], index: 6, kind: output, shape index: {0}]   ;;  %s897_s7 = inlined_call_operand.hbm [shape: f32[2,32], index: 7, kind: output, shape index: {1}]   ;;  %s898_s8 = inlined_call_operand.hbm [shape: f32[2,32], index: 8, kind: output, shape index: {2}]  }
   0x1   :  { %15 = vsyncpa [#allocation7], 0  ;;  %s792_s27 = smov 0  }
   0x2 LB: > { %s798_s28 = sadd.s32 4294967295, %s738_s27   ;;  %p592_p0 = scmp.ge.s32.totalorder %s738_s27, 1  ;;  %s738_s27 = sphi %s792_s27, %s21_s27  }
   0x3   : > { %p258_p1 = scmp.lt.s32.totalorder %s738_s27, 9 }
   0x5   : > { %p259_p2 = pnand %p592_p0, %p258_p1 }
   0x6   : > { %p290_p3 = scmp.lt.s32.totalorder (!%p259_p2), %s798_s28, 7  ;;  %p595_p4 = scmp.ne.s32.totalorder (!%p259_p2), %s798_s28, 0 }
   0x7   : > { %262 = sbr.rel (%p259_p2) target bundleno = 998 (0x3e6), region = 44 }
   0xe   : > { %s291_s29 = scalar_select %p290_p3, %s798_s28, 7 }
   0xf   : > { %302 = sbr.rel (%p595_p4) target bundleno = 22 (0x16), region = 48  ;;  %v303_v0 = vld [vmem:[%s891_s1] sm:$0x3] (!%p595_p4)  ;;  %vm304_vm0 = vcmask (!%p595_p4), 254976  }
  0x10   : > { %s593_s30 = sshll.u32 %s291_s29, 1  ;;  %v306_v1 = vld [vmem:[%s892_s2] sm:$0x3] (!%p595_p4)  ;;  %305 = vst.msk [vmem:[#allocation2] sm:$0x3] (!%p595_p4), %vm304_vm0, %v303_v0 }
  0x11   : > { %s293_s11 = scalar_lea.vmem %s890_s0, %s593_s30  ;;  %s810_s14 = scalar_lea.vmem %s896_s6, %s593_s30  ;;  %307 = vst.msk [vmem:[#allocation3] sm:$0x3] (!%p595_p4), %vm304_vm0, %v306_v1 }
  0x16 PF: > { %v660_v2 = vld [vmem:[%s893_s3] sm:$0xff]   ;;  %v740_v3 = vmov 0.0   ;;  %v661_v4 = vld [vmem:[%s893_s3 + $0x8] sm:$0xff]   ;;  %vm741_vm1 = vmmov 0   ;;  %vm328_vm2 = vcmask 261120   ;;  %s742_s23 = smov 64  }
  0x17   : > { %617 = vmatprep.subr.bf16.mxu0 %v740_v3  ;;  %625 = vmatprep.subr.bf16.mxu1 %v740_v3  ;;  %v308_v5 = vld [vmem:[#allocation2] sm:$0x3]  ;;  %s743_s24 = smov 32   ;;  %v663_v26 = vld [vmem:[%s894_s4 + $0x8] sm:$0xff]   ;;  %s744_s9 = smov 96   ;;  %vm405_vm3 = vcmask 254976  }
  0x18   : > { %618 = vmatpush3.bf16.msra.mxu0 %v660_v2  ;;  %621 = vmatprep.mubr.msk.bf16.mxu0 %vm741_vm1, %v740_v3  ;;  %v311_v6 = vpack.c.bf16 %v308_v5, %v308_v5  ;;  %v310_v7 = vld [vmem:[%s293_s11] sm:$0x3]  ;;  %v309_v14 = vld [vmem:[#allocation3] sm:$0x3]  ;;  %p604_p5 = scmp.ne.s32.totalorder %s798_s28, 7 }
  0x19   : > { %619 = vmatprep.subr.bf16.mxu0 %v740_v3  ;;  %629 = vmatprep.mubr.msk.bf16.mxu1 %vm741_vm1, %v740_v3  ;;  %v662_v25 = vld [vmem:[%s894_s4] sm:$0xff]  }
  0x1a   : > { %626 = vmatpush3.bf16.msra.mxu1 %v662_v25  ;;  %v600_v34 = vld [vmem:[%s895_s5] ss:$0 sm:$0xff] }
  0x1b   : > { %627 = vmatprep.subr.bf16.mxu1 %v740_v3 }
  0x1c   : > { %620 = vmatpush3.bf16.msra.mxu0 %v661_v4 }
  0x1e   : > { %628 = vmatpush3.bf16.msra.mxu1 %v663_v26 }
  0x1f   : > { %622 = vmatmul.mubr.msk.bf16.vlgmr.msra.gmra.mrb[0].mxu0 %vm328_vm2, %v311_v6 }
  0xf2   : > { %v366_v8 = vpop.f32.mrb[0].mxu0 }
  0xf3   : > { %v372_v9 = vadd.f32 %v366_v8, %v310_v7  ;;  %v623_v10 = vpop.f32.mrb[1].mxu0 }
  0xf4   : > { %v369_v11 = vpop.f32.mrb[2].mxu0 }
  0xf5   : > { %664 = vtanh.f32 %v372_v9  ;;  %v624_v12 = vpop.f32.mrb[3].mxu0  ;;  %v599_v15 = vmul.f32 -1.442695, %v372_v9 }
  0xf7   : > { %666 = vpow2.f32 %v599_v15 }
  0xff   : > { %v665_v13 = vpop.eup %664 }
 0x100   : > { %386 = vrot.lane.b32.xlu0 %v665_v13, %s742_s23 }
 0x101   : > { %v667_v16 = vpop.eup %666 }
 0x102   : > { %v376_v17 = vadd.f32 1.0, %v667_v16 }
 0x104   : > { %381 = vrot.lane.b32.xlu0 %v309_v14, %s743_s24  ;;  %668 = vrcp.f32 %v376_v17 }
 0x10e   : > { %v669_v18 = vpop.eup %668 }
 0x172   : > { %v387_v19 = vpop.permute.xlu0 %386 }
 0x173   : > { %v389_v20 = vmul.f32 %v669_v18, %v387_v19 }
 0x175   : > { %391 = vrot.lane.b32.xlu1 %v389_v20, %s743_s24 }
 0x176   : > { %v382_v21 = vpop.permute.xlu0 %381 }
 0x177   : > { %v384_v22 = vmul.f32 %v669_v18, %v382_v21 }
 0x1e7   : > { %v392_v23 = vpop.permute.xlu1 %391 }
 0x1e8   : > { %v394_v24 = vadd.f32 %v392_v23, %v384_v22 }
 0x1ea   : > { %670 = vtanh.f32 %v394_v24 }
 0x1f4   : > { %v671_v27 = vpop.eup %670 }
 0x1f5   : > { %397 = vrot.lane.b32.xlu1 %v671_v27, %s742_s23 }
 0x267   : > { %v398_v28 = vpop.permute.xlu1 %397 }
 0x268   : > { %v400_v29 = vmul.f32 %v669_v18, %v398_v28 }
 0x26a   : > { %v412_v30 = vpack.c.bf16 %v400_v29, %v400_v29  ;;  %402 = vrot.lane.b32.xlu1 %v400_v29, %s743_s24 }
 0x26c   : > { %425 = vrot.lane.b32.xlu0 %v412_v30, %s743_s24 }
 0x270   : > { %408 = vrot.lane.b32.xlu0 %v394_v24, %s744_s9 }
 0x2dc   : > { %v403_v31 = vpop.permute.xlu1 %402 }
 0x2dd   : > { %406 = vst.msk [vmem:[#allocation2] sm:$0x3] %vm405_vm3, %v403_v31  ;;  %487 = vst.msk [vmem:[#allocation4] sm:$0x3] (!%p604_p5), %vm405_vm3, %v403_v31 }
 0x2de   : > { %v426_v32 = vpop.permute.xlu0 %425 }
 0x2df   : > { %630 = vmatmul.mubr.msk.bf16.vlgmr.msra.gmra.mrb[0].mxu1 %vm328_vm2, %v426_v32 }
 0x2e2   : > { %v409_v33 = vpop.permute.xlu0 %408 }
 0x2e3   : > { %411 = vst.msk [vmem:[#allocation3] sm:$0x3] %vm405_vm3, %v409_v33  ;;  %488 = vst.msk [vmem:[#allocation6] sm:$0x3] (!%p604_p5), %vm405_vm3, %v409_v33 }
 0x3af   : > { %486 = sbr.rel (%p604_p5) target bundleno = 950 (0x3b6), region = 52 }
 0x3b2   : > { %v476_v35 = vpop.f32.mrb[0].mxu1 }
 0x3b3   : > { %v477_v36 = vadd.f32 %v600_v34, %v476_v35  ;;  %v631_v37 = vpop.f32.mrb[1].mxu1 }
 0x3b4   : > { %v479_v38 = vpop.f32.mrb[2].mxu1 }
 0x3b5   : > { %482 = vst [vmem:[%s810_s14] sm:$0x3] %v477_v36  ;;  %v632_v39 = vpop.f32.mrb[3].mxu1 }
 0x3b6 PF: > { %p641_p6 = scmp.eq.s32.totalorder %s798_s28, 7  ;;  %s745_s12 = smov [#allocation4]  }
 0x3b7   : > { %s503_s13 = sshll.u32 %s745_s12, 4  ;;  %s746_s15 = smov [#allocation6]   ;;  %s504_s13 = int_to_ptr.vmem [resolvable:$true] %s503_s13 }
 0x3b8   : > { %s514_s16 = sshll.u32 %s746_s15, 4  ;;  %s672_s17 = scalar_lea.vmem %s504_s13, 32  ;;  %s515_s16 = int_to_ptr.vmem [resolvable:$true] %s514_s16 }
 0x3b9   : > { %p673_p7 = scmp.ne.s32.totalorder %s504_s13, %s672_s17  ;;  %p679_p10 = scmp.lt.s32.totalorder %s504_s13, %s504_s13 }
 0x3ba   : > { %p680_p11 = scmp.lt.s32.totalorder %s672_s17, %s672_s17 }
 0x3bb   : > { %p674_p8 = pnand %p673_p7, %p641_p6 }
 0x3bc   : > { %p681_p12 = por %p680_p11, %p679_p10 }
 0x3bd   : > { %p675_p9 = pneg %p674_p8 }
 0x3bf   : > { %p682_p13 = pnand %p681_p12, %p675_p9 }
 0x3c1   : > { %685 = shalt.err (!%p682_p13)
}
 0x3c2   : > { %s686_s19 = scalar_lea.hbm %s897_s7, 32 }
 0x3c3   : > { %p687_p0 = scmp.ne.s32.totalorder %s897_s7, %s686_s19  ;;  %p692_p3 = scmp.lt.u32.totalorder %s686_s19, %s897_s7 }
 0x3c5   : > { %p688_p1 = pnand %p687_p0, %p641_p6 }
 0x3c7   : > { %p689_p2 = pneg %p688_p1 }
 0x3c9   : > { %p694_p4 = pnand %p692_p3, %p689_p2 }
 0x3cb   : > { %697 = shalt.err (!%p694_p4)
}
 0x3cc   : > { %634 = dma.vmem_to_hbm [thread:$0]  (%p641_p6), %s504_s13, 32, %s897_s7, [#allocation5]  }
 0x3cd   : > { %s698_s26 = scalar_lea.vmem %s515_s16, 32  ;;  %p705_p9 = scmp.lt.s32.totalorder %s515_s16, %s515_s16 }
 0x3ce   : > { %p699_p5 = scmp.ne.s32.totalorder %s515_s16, %s698_s26  ;;  %p706_p10 = scmp.lt.s32.totalorder %s698_s26, %s698_s26 }
 0x3d0   : > { %p700_p7 = pnand %p699_p5, %p641_p6  ;;  %p707_p11 = por %p706_p10, %p705_p9 }
 0x3d2   : > { %p701_p8 = pneg %p700_p7 }
 0x3d4   : > { %p708_p12 = pnand %p707_p11, %p701_p8 }
 0x3d6   : > { %711 = shalt.err (!%p708_p12)
}
 0x3d7   : > { %s712_s9 = scalar_lea.hbm %s898_s8, 32 }
 0x3d8   : > { %p713_p13 = scmp.ne.s32.totalorder %s898_s8, %s712_s9  ;;  %p718_p2 = scmp.lt.u32.totalorder %s712_s9, %s898_s8 }
 0x3da   : > { %p714_p0 = pnand %p713_p13, %p641_p6 }
 0x3dc   : > { %p715_p1 = pneg %p714_p0 }
 0x3de   : > { %p720_p3 = pnand %p718_p2, %p715_p1 }
 0x3e0   : > { %723 = shalt.err (!%p720_p3)
}
 0x3e1   : > { %636 = dma.vmem_to_hbm [thread:$0]  (%p641_p6), %s515_s16, 32, %s898_s8, [#allocation7]  }
 0x3e2   : > { %729 = dma.done.wait (%p641_p6), [#allocation5], 32  }
 0x3e3   : > { %731 = vsyncadd (%p641_p6), [#allocation5], 4294967264 }
 0x3e4   : > { %733 = dma.done.wait (%p641_p6), [#allocation7], 32  }
 0x3e5   : > { %735 = vsyncadd (%p641_p6), [#allocation7], 4294967264 }
 0x3e6 PF: > { %s21_s27 = sadd.s32 1, %s738_s27  }
 0x3e7   : > { %p18_p4 = scmp.ge.s32.totalorder %s21_s27, 10  }
 0x3e9   :  { %20 = sbr.rel (!%p18_p4) target bundleno = 2 (0x2), region = 99 }
 0x3f0   :  { %538 = vsyncpa [#allocation5], 1 }
 0x3f1   :  { %540 = vsyncpa [#allocation5 + $0x1], 1 }
 0x3f2   :  { %541 = vsyncpa [#allocation7], 1 }

</bundles_post_ra>
